<compile_context>
chip_gen: v6e
topology: v6e:2x2x1
jax: 0.10.0
libtpu: 0.0.40
codegen_flags: <defaults>
</compile_context>

<pallas_src>
import functools

import numpy as np
import jax
import jax.numpy as jnp
from jax.experimental import pallas as pl
from jax.experimental.pallas import tpu as pltpu

LN_EPS = 1e-6     # LayerNorm epsilon in the PyTorch module
BN_EPS = 1e-3     # ConformerConfig.batch_norm_epsilon


def _pass1_kernel(x_ref, pad_ref, valid_ref, lns_ref, lnb_ref,
                  w12_ref, b12_ref, cw_ref,
                  conv_ref, stats_ref, *, kernel_size):
  """One utterance tile: LN -> fused GLU matmul -> depthwise conv -> partial BN stats."""
  T, D = x_ref.shape
  padn = (kernel_size - 1) // 2

  x = x_ref[...].astype(jnp.float32)           # (T, D) bf16 -> f32 for LN stats
  mask = 1.0 - pad_ref[...]                    # (T, 1): 1.0 on valid frames

  # ---- LayerNorm with weight = (1 + scale), bias ----
  mu = jnp.mean(x, axis=-1, keepdims=True)
  var = jnp.mean(jnp.square(x - mu), axis=-1, keepdims=True)
  xn = (x - mu) * jax.lax.rsqrt(var + LN_EPS)
  xn = xn * (1.0 + lns_ref[...]) + lnb_ref[...]

  # ---- GLU: one fused (T, D) @ (D, 2D) bf16 matmul, f32 accumulation ----
  ag = jnp.dot(xn.astype(jnp.bfloat16), w12_ref[...],
               preferred_element_type=jnp.float32) + b12_ref[...]
  y = ag[:, :D] * jax.nn.sigmoid(ag[:, D:])    # lin1(x) * sigmoid(lin2(x))
  y = y * mask                                 # zero padded frames

  # ---- Depthwise conv1d along time ('same', no bias) via sublane rolls ----
  # out[t] = sum_k w[k] * y[t - (padn - k)]; contributions whose source index
  # leaves [0, T) are killed by the host-precomputed validity mask (this also
  # removes wrap-around rows from the circular roll).  Taps stay on the XLU.
  cw = cw_ref[...]                             # (K, D) f32
  out = y * cw[padn:padn + 1, :]               # shift == 0 tap
  for k in range(kernel_size):                 # small static unroll
    shift = padn - k
    if shift == 0:
      continue
    contrib = pltpu.roll(y, shift=shift % T, axis=0) * valid_ref[k]
    out = out + contrib * cw[k:k + 1, :]

  conv_ref[...] = out.astype(conv_ref.dtype)

  # ---- Per-tile masked-BN partial statistics (count, sum, centered M2) ----
  cnt = jnp.sum(mask)
  s = jnp.sum(out * mask, axis=0, keepdims=True)                   # (1, D)
  mean_t = s / jnp.maximum(cnt, 1.0)
  m2 = jnp.sum(jnp.square(out - mean_t) * mask, axis=0, keepdims=True)
  cnt_row = jnp.zeros((1, D), jnp.float32) + cnt
  stats_ref[...] = jnp.concatenate([cnt_row, s, m2], axis=0)[None]  # (1, 3, D)


def _pass2_kernel(conv_ref, pad_ref, mul_ref, add_ref, w3_ref, b3_ref, o_ref):
  """Row tile: BatchNorm (pre-folded scale/shift) -> mask -> SiLU -> lin3."""
  conv = conv_ref[...].astype(jnp.float32)
  mask = 1.0 - pad_ref[...]
  bn = (conv * mul_ref[...] + add_ref[...]) * mask       # masked_fill(pad, 0)
  act = bn * jax.nn.sigmoid(bn)                          # SiLU / swish
  o_ref[...] = (jnp.dot(act.astype(jnp.bfloat16), w3_ref[...],
                        preferred_element_type=jnp.float32)
                + b3_ref[...]).astype(o_ref.dtype)


def prepare_conv_block_params(params):
  """One-time weight fusion / casting (do NOT run per forward call)."""
  f32row = lambda a: jnp.asarray(a, jnp.float32).reshape(1, -1)
  return dict(
      ln_scale=f32row(params["ln_scale"]),
      ln_bias=f32row(params["ln_bias"]),
      w12=jnp.concatenate([params["w1"], params["w2"]], axis=1
                          ).astype(jnp.bfloat16),                 # (D, 2D)
      b12=jnp.concatenate([f32row(params["b1"]), f32row(params["b2"])], axis=1),
      conv_w=jnp.asarray(params["conv_w"], jnp.float32),           # (K, D)
      bn_scale=f32row(params["bn_scale"]),
      bn_bias=f32row(params["bn_bias"]),
      w3=jnp.asarray(params["w3"], jnp.bfloat16),                  # (D, D)
      b3=f32row(params["b3"]),
  )


def convolution_block(x, paddings, prepped, *, kernel_size=5, row_tile=512,
                      out_dtype=jnp.float32, interpret=False):
  """x: (B, T, D); paddings: (B, T) with 1.0 at padded frames. Returns (B, T, D)."""
  B, T, D = x.shape
  M = B * T
  K = kernel_size
  padn = (K - 1) // 2
  assert D % 128 == 0, "encoder_dim must be a multiple of 128 (lane-aligned)"
  assert T % 8 == 0, "T must be a multiple of 8"   # TODO(synk): pad ragged T

  x2 = x.reshape(M, D).astype(jnp.bfloat16)        # bf16 activation I/O
  pad2 = paddings.reshape(M, 1).astype(jnp.float32)

  # Per-tap validity of the rolled source time index: a host-side (trace-time)
  # constant, so the kernel carries no iota / modulo / compare work.
  t = np.arange(T)
  valid_np = np.stack([((t - (padn - k)) >= 0) & ((t - (padn - k)) < T)
                       for k in range(K)], axis=0).astype(np.float32)
  valid = jnp.asarray(valid_np[:, :, None])        # (K, T, 1)

  const2 = lambda shape: pl.BlockSpec(shape, lambda i: (0, 0))
  const3 = lambda shape: pl.BlockSpec(shape, lambda i: (0, 0, 0))
  cparams = pltpu.CompilerParams(
      dimension_semantics=("parallel",),
      vmem_limit_bytes=48 * 1024 * 1024)           # within v7x 64 MiB physical

  # ---- Pass 1: LN -> GLU -> depthwise conv; bf16 conv tiles + partial stats ----
  conv_out, stats = pl.pallas_call(
      functools.partial(_pass1_kernel, kernel_size=K),
      grid=(B,),
      in_specs=[pl.BlockSpec((T, D), lambda i: (i, 0)),      # x (streamed)
                pl.BlockSpec((T, 1), lambda i: (i, 0)),      # paddings
                const3((K, T, 1)),                           # conv tap validity
                const2((1, D)), const2((1, D)),              # LN scale / bias
                const2((D, 2 * D)), const2((1, 2 * D)),      # fused GLU w / b
                const2((K, D))],                             # depthwise conv w
      out_specs=[pl.BlockSpec((T, D), lambda i: (i, 0)),
                 pl.BlockSpec((1, 3, D), lambda i: (i, 0, 0))],
      out_shape=[jax.ShapeDtypeStruct((M, D), jnp.bfloat16),
                 jax.ShapeDtypeStruct((B, 3, D), jnp.float32)],
      compiler_params=cparams,
      interpret=interpret,
  )(x2, pad2, valid,
    prepped["ln_scale"], prepped["ln_bias"],
    prepped["w12"], prepped["b12"], prepped["conv_w"])

  # ---- Combine per-tile masked-BN stats (Chan parallel variance; tiny XLA op) ----
  cnt_t = stats[:, 0, 0]                           # (n_tiles,)
  sum_t = stats[:, 1, :]                           # (n_tiles, D)
  m2_t = stats[:, 2, :]                            # (n_tiles, D)
  total = jnp.maximum(jnp.sum(cnt_t), 1.0)
  mean = jnp.sum(sum_t, axis=0) / total            # (D,)
  mean_t = sum_t / jnp.maximum(cnt_t, 1.0)[:, None]
  var = (jnp.sum(m2_t, axis=0)
         + jnp.sum(cnt_t[:, None] * jnp.square(mean_t - mean[None, :]), axis=0)
         ) / total
  var = jnp.maximum(var, 0.0)
  # TODO(synk): running_mean/running_var buffer updates are a stateful training
  # side effect of the PyTorch module; `mean`/`var` above are what it would use.
  bn_mul_d = (1.0 + prepped["bn_scale"].reshape(-1)) * jax.lax.rsqrt(var + BN_EPS)
  bn_add_d = prepped["bn_bias"].reshape(-1) - mean * bn_mul_d
  bn_mul = bn_mul_d.reshape(1, D)
  bn_add = bn_add_d.reshape(1, D)

  # ---- Pass 2: BN -> mask -> SiLU -> lin3, streamed over row tiles ----
  tm = min(row_tile, M)
  assert tm % 8 == 0 and M % tm == 0  # TODO(synk): pad M for ragged row tiles
  out = pl.pallas_call(
      _pass2_kernel,
      grid=(M // tm,),
      in_specs=[pl.BlockSpec((tm, D), lambda i: (i, 0)),     # conv intermediate
                pl.BlockSpec((tm, 1), lambda i: (i, 0)),     # paddings
                const2((1, D)), const2((1, D)),              # folded BN mul/add
                const2((D, D)), const2((1, D))],             # w3 / b3
      out_specs=pl.BlockSpec((tm, D), lambda i: (i, 0)),
      out_shape=jax.ShapeDtypeStruct((M, D), out_dtype),
      compiler_params=cparams,
      interpret=interpret,
  )(conv_out, pad2, bn_mul, bn_add, prepped["w3"], prepped["b3"])
  return out.reshape(B, T, D)


def _reference(x, paddings, params, kernel_size=5):
  """Pure-JAX f32 reference mirroring the PyTorch module (training mode)."""
  B, T, D = x.shape
  pad = paddings[:, :, None].astype(jnp.float32)
  mask = 1.0 - pad
  mu = jnp.mean(x, -1, keepdims=True)
  var = jnp.mean(jnp.square(x - mu), -1, keepdims=True)
  xn = (x - mu) * jax.lax.rsqrt(var + LN_EPS)
  xn = xn * (1.0 + params["ln_scale"]) + params["ln_bias"]
  a = xn @ params["w1"] + params["b1"]
  g = xn @ params["w2"] + params["b2"]
  y = (a * jax.nn.sigmoid(g)) * mask
  padn = (kernel_size - 1) // 2
  yp = jnp.pad(y, ((0, 0), (padn, padn), (0, 0)))
  conv = sum(yp[:, k:k + T, :] * params["conv_w"][k] for k in range(kernel_size))
  masked = conv * mask
  count = jnp.sum(mask)
  mean = jnp.sum(masked, axis=(0, 1)) / count
  var_bn = jnp.sum(jnp.square(masked - mean) * mask, axis=(0, 1)) / count
  v = (1.0 + params["bn_scale"]) * jax.lax.rsqrt(var_bn + BN_EPS)
  bn = ((conv - mean) * v + params["bn_bias"]) * mask
  act = bn * jax.nn.sigmoid(bn)
  return act @ params["w3"] + params["b3"]


if __name__ == "__main__":
  # Small shapes consistent with the module: batch=2, seq=16, encoder_dim=128,
  # convolution_kernel_size=5.
  B, T, D, K = 2, 16, 128, 5
  key = jax.random.PRNGKey(0)
  ks = jax.random.split(key, 12)

  x = jax.random.normal(ks[0], (B, T, D), jnp.float32)
  lengths = jnp.array([T, T - 4])
  paddings = (jnp.arange(T)[None, :] >= lengths[:, None]).astype(jnp.float32)

  def init(k, shape, scale):
    return scale * jax.random.normal(k, shape, jnp.float32)

  # Linear weights stored pre-transposed as (in, out) so y = x @ W + b
  # (== PyTorch x @ W_pt.T + b).  conv_w[k, d] == torch conv1.weight[d, 0, k].
  params = dict(
      ln_scale=init(ks[1], (1, D), 0.1),
      ln_bias=init(ks[2], (1, D), 0.1),
      w1=init(ks[3], (D, D), D ** -0.5),
      b1=init(ks[4], (1, D), 0.1),
      w2=init(ks[5], (D, D), D ** -0.5),
      b2=init(ks[6], (1, D), 0.1),
      conv_w=init(ks[7], (K, D), K ** -0.5),
      bn_scale=init(ks[8], (1, D), 0.1),
      bn_bias=init(ks[9], (1, D), 0.1),
      w3=init(ks[10], (D, D), D ** -0.5),
      b3=init(ks[11], (1, D), 0.1),
  )

  prepped = prepare_conv_block_params(params)   # weight fusion/cast done ONCE
  fwd = jax.jit(functools.partial(convolution_block, kernel_size=K, row_tile=16))
  out = jax.block_until_ready(fwd(x, paddings, prepped))
  assert out.shape == (B, T, D)
  assert bool(jnp.all(jnp.isfinite(out)))

  ref = _reference(x, paddings, params, kernel_size=K)
  max_err = float(jnp.max(jnp.abs(out - ref)))
  mean_err = float(jnp.mean(jnp.abs(out - ref)))
  # bf16 activation I/O + bf16 MXU operands vs. a pure-f32 reference.
  assert max_err < 2e-1, f"max abs error vs f32 reference: {max_err}"
  assert mean_err < 3e-2, f"mean abs error vs f32 reference: {mean_err}"
  print("KERNEL_OK")
</pallas_src>

<mosaic_0001>
module attributes {stable_mosaic.version = 11 : i64} {
  func.func @_pass1_kernel(%arg0: i32, %arg1: memref<16x128xbf16, #tpu.memory_space<vmem>>, %arg2: memref<16x1xf32, #tpu.memory_space<vmem>>, %arg3: memref<5x16x1xf32, #tpu.memory_space<vmem>>, %arg4: memref<1x128xf32, #tpu.memory_space<vmem>>, %arg5: memref<1x128xf32, #tpu.memory_space<vmem>>, %arg6: memref<128x256xbf16, #tpu.memory_space<vmem>>, %arg7: memref<1x256xf32, #tpu.memory_space<vmem>>, %arg8: memref<5x128xf32, #tpu.memory_space<vmem>>, %arg9: memref<16x128xbf16, #tpu.memory_space<vmem>>, %arg10: memref<1x3x128xf32, #tpu.memory_space<vmem>>) attributes {dimension_semantics = [#tpu.dimension_semantics<parallel>], iteration_bounds = array<i64: 2>, scalar_prefetch = 0 : i64, scratch_operands = 0 : i64, tpu.core_type = #tpu.core_type<tc>, window_params = [{transform_indices = @transform_0, window_bounds = array<i64: 16, 128>}, {transform_indices = @transform_1, window_bounds = array<i64: 16, 1>}, {pipeline_mode = #tpu.pipeline_mode<synchronous>, transform_indices = @transform_2, window_bounds = array<i64: 5, 16, 1>}, {pipeline_mode = #tpu.pipeline_mode<synchronous>, transform_indices = @transform_3, window_bounds = array<i64: 1, 128>}, {pipeline_mode = #tpu.pipeline_mode<synchronous>, transform_indices = @transform_4, window_bounds = array<i64: 1, 128>}, {pipeline_mode = #tpu.pipeline_mode<synchronous>, transform_indices = @transform_5, window_bounds = array<i64: 128, 256>}, {pipeline_mode = #tpu.pipeline_mode<synchronous>, transform_indices = @transform_6, window_bounds = array<i64: 1, 256>}, {pipeline_mode = #tpu.pipeline_mode<synchronous>, transform_indices = @transform_7, window_bounds = array<i64: 5, 128>}, {transform_indices = @transform_8, window_bounds = array<i64: 16, 128>}, {transform_indices = @transform_9, window_bounds = array<i64: 1, 3, 128>}]} {
    %c0 = arith.constant 0 : index
    %c0_0 = arith.constant 0 : index
    %0 = vector.load %arg1[%c0, %c0_0] : memref<16x128xbf16, #tpu.memory_space<vmem>>, vector<16x128xbf16>
    %1 = arith.extf %0 : vector<16x128xbf16> to vector<16x128xf32>
    %c0_1 = arith.constant 0 : index
    %c0_2 = arith.constant 0 : index
    %2 = vector.load %arg2[%c0_1, %c0_2] : memref<16x1xf32, #tpu.memory_space<vmem>>, vector<16x1xf32>
    %cst = arith.constant 1.000000e+00 : f32
    %3 = vector.broadcast %cst : f32 to vector<16x1xf32>
    %4 = arith.subf %3, %2 : vector<16x1xf32>
    %cst_3 = arith.constant dense<0.000000e+00> : vector<16xf32>
    %5 = vector.multi_reduction <add>, %1, %cst_3 [1] : vector<16x128xf32> to vector<16xf32>
    %6 = vector.shape_cast %5 : vector<16xf32> to vector<16x1xf32>
    %cst_4 = arith.constant 1.280000e+02 : f32
    %7 = vector.broadcast %cst_4 : f32 to vector<16x1xf32>
    %8 = arith.divf %6, %7 : vector<16x1xf32>
    %9 = vector.broadcast %8 : vector<16x1xf32> to vector<16x128xf32>
    %10 = arith.subf %1, %9 : vector<16x128xf32>
    %11 = arith.mulf %10, %10 : vector<16x128xf32>
    %cst_5 = arith.constant dense<0.000000e+00> : vector<16xf32>
    %12 = vector.multi_reduction <add>, %11, %cst_5 [1] : vector<16x128xf32> to vector<16xf32>
    %13 = vector.shape_cast %12 : vector<16xf32> to vector<16x1xf32>
    %cst_6 = arith.constant 1.280000e+02 : f32
    %14 = vector.broadcast %cst_6 : f32 to vector<16x1xf32>
    %15 = arith.divf %13, %14 : vector<16x1xf32>
    %16 = vector.broadcast %8 : vector<16x1xf32> to vector<16x128xf32>
    %17 = arith.subf %1, %16 : vector<16x128xf32>
    %cst_7 = arith.constant 9.99999997E-7 : f32
    %18 = vector.broadcast %cst_7 : f32 to vector<16x1xf32>
    %19 = arith.addf %15, %18 : vector<16x1xf32>
    %20 = math.rsqrt %19 : vector<16x1xf32>
    %21 = vector.broadcast %20 : vector<16x1xf32> to vector<16x128xf32>
    %22 = arith.mulf %17, %21 : vector<16x128xf32>
    %c0_8 = arith.constant 0 : index
    %c0_9 = arith.constant 0 : index
    %23 = vector.load %arg4[%c0_8, %c0_9] : memref<1x128xf32, #tpu.memory_space<vmem>>, vector<1x128xf32>
    %cst_10 = arith.constant 1.000000e+00 : f32
    %24 = vector.broadcast %cst_10 : f32 to vector<1x128xf32>
    %25 = arith.addf %24, %23 : vector<1x128xf32>
    %26 = vector.broadcast %25 : vector<1x128xf32> to vector<16x128xf32>
    %27 = arith.mulf %22, %26 : vector<16x128xf32>
    %c0_11 = arith.constant 0 : index
    %c0_12 = arith.constant 0 : index
    %28 = vector.load %arg5[%c0_11, %c0_12] : memref<1x128xf32, #tpu.memory_space<vmem>>, vector<1x128xf32>
    %29 = vector.broadcast %28 : vector<1x128xf32> to vector<16x128xf32>
    %30 = arith.addf %27, %29 : vector<16x128xf32>
    %31 = arith.truncf %30 : vector<16x128xf32> to vector<16x128xbf16>
    %c0_13 = arith.constant 0 : index
    %c0_14 = arith.constant 0 : index
    %32 = vector.load %arg6[%c0_13, %c0_14] : memref<128x256xbf16, #tpu.memory_space<vmem>>, vector<128x256xbf16>
    %cst_15 = arith.constant dense<0.000000e+00> : vector<16x256xf32>
    %33 = tpu.matmul %31, %32, %cst_15 {dimension_numbers = #tpu.dot_dimension_numbers<[1], [0], [0], [1], [0, 0, 1, 1], [], []>} : vector<16x128xbf16>, vector<128x256xbf16>, vector<16x256xf32> -> vector<16x256xf32>
    %c0_16 = arith.constant 0 : index
    %c0_17 = arith.constant 0 : index
    %34 = vector.load %arg7[%c0_16, %c0_17] : memref<1x256xf32, #tpu.memory_space<vmem>>, vector<1x256xf32>
    %35 = vector.broadcast %34 : vector<1x256xf32> to vector<16x256xf32>
    %36 = arith.addf %33, %35 : vector<16x256xf32>
    %37 = vector.extract_strided_slice %36 {offsets = [0, 0], sizes = [16, 128], strides = [1, 1]} : vector<16x256xf32> to vector<16x128xf32>
    %38 = vector.extract_strided_slice %36 {offsets = [0, 128], sizes = [16, 128], strides = [1, 1]} : vector<16x256xf32> to vector<16x128xf32>
    %39 = arith.negf %38 : vector<16x128xf32>
    %40 = math.exp %39 : vector<16x128xf32>
    %cst_18 = arith.constant 1.000000e+00 : f32
    %41 = vector.broadcast %cst_18 : f32 to vector<16x128xf32>
    %42 = arith.addf %41, %40 : vector<16x128xf32>
    %43 = arith.divf %41, %42 : vector<16x128xf32>
    %44 = arith.mulf %37, %43 : vector<16x128xf32>
    %45 = vector.broadcast %4 : vector<16x1xf32> to vector<16x128xf32>
    %46 = arith.mulf %44, %45 : vector<16x128xf32>
    %c0_19 = arith.constant 0 : index
    %c0_20 = arith.constant 0 : index
    %47 = vector.load %arg8[%c0_19, %c0_20] : memref<5x128xf32, #tpu.memory_space<vmem>>, vector<5x128xf32>
    %48 = vector.extract_strided_slice %47 {offsets = [2, 0], sizes = [1, 128], strides = [1, 1]} : vector<5x128xf32> to vector<1x128xf32>
    %49 = vector.broadcast %48 : vector<1x128xf32> to vector<16x128xf32>
    %50 = arith.mulf %46, %49 : vector<16x128xf32>
    %c2_i32 = arith.constant 2 : i32
    %51 = tpu.dynamic_rotate %46 by %c2_i32 dim 0 : vector<16x128xf32>, i32 -> vector<16x128xf32>
    %c0_21 = arith.constant 0 : index
    %c0_22 = arith.constant 0 : index
    %c0_23 = arith.constant 0 : index
    %52 = vector.load %arg3[%c0_21, %c0_22, %c0_23] : memref<5x16x1xf32, #tpu.memory_space<vmem>>, vector<1x16x1xf32>
    %53 = vector.shape_cast %52 : vector<1x16x1xf32> to vector<16x1xf32>
    %54 = vector.broadcast %53 : vector<16x1xf32> to vector<16x128xf32>
    %55 = arith.mulf %51, %54 : vector<16x128xf32>
    %56 = vector.extract_strided_slice %47 {offsets = [0, 0], sizes = [1, 128], strides = [1, 1]} : vector<5x128xf32> to vector<1x128xf32>
    %57 = vector.broadcast %56 : vector<1x128xf32> to vector<16x128xf32>
    %58 = arith.mulf %55, %57 : vector<16x128xf32>
    %59 = arith.addf %50, %58 : vector<16x128xf32>
    %c1_i32 = arith.constant 1 : i32
    %60 = tpu.dynamic_rotate %46 by %c1_i32 dim 0 : vector<16x128xf32>, i32 -> vector<16x128xf32>
    %c1 = arith.constant 1 : index
    %c0_24 = arith.constant 0 : index
    %c0_25 = arith.constant 0 : index
    %61 = vector.load %arg3[%c1, %c0_24, %c0_25] : memref<5x16x1xf32, #tpu.memory_space<vmem>>, vector<1x16x1xf32>
    %62 = vector.shape_cast %61 : vector<1x16x1xf32> to vector<16x1xf32>
    %63 = vector.broadcast %62 : vector<16x1xf32> to vector<16x128xf32>
    %64 = arith.mulf %60, %63 : vector<16x128xf32>
    %65 = vector.extract_strided_slice %47 {offsets = [1, 0], sizes = [1, 128], strides = [1, 1]} : vector<5x128xf32> to vector<1x128xf32>
    %66 = vector.broadcast %65 : vector<1x128xf32> to vector<16x128xf32>
    %67 = arith.mulf %64, %66 : vector<16x128xf32>
    %68 = arith.addf %59, %67 : vector<16x128xf32>
    %c15_i32 = arith.constant 15 : i32
    %69 = tpu.dynamic_rotate %46 by %c15_i32 dim 0 : vector<16x128xf32>, i32 -> vector<16x128xf32>
    %c3 = arith.constant 3 : index
    %c0_26 = arith.constant 0 : index
    %c0_27 = arith.constant 0 : index
    %70 = vector.load %arg3[%c3, %c0_26, %c0_27] : memref<5x16x1xf32, #tpu.memory_space<vmem>>, vector<1x16x1xf32>
    %71 = vector.shape_cast %70 : vector<1x16x1xf32> to vector<16x1xf32>
    %72 = vector.broadcast %71 : vector<16x1xf32> to vector<16x128xf32>
    %73 = arith.mulf %69, %72 : vector<16x128xf32>
    %74 = vector.extract_strided_slice %47 {offsets = [3, 0], sizes = [1, 128], strides = [1, 1]} : vector<5x128xf32> to vector<1x128xf32>
    %75 = vector.broadcast %74 : vector<1x128xf32> to vector<16x128xf32>
    %76 = arith.mulf %73, %75 : vector<16x128xf32>
    %77 = arith.addf %68, %76 : vector<16x128xf32>
    %c14_i32 = arith.constant 14 : i32
    %78 = tpu.dynamic_rotate %46 by %c14_i32 dim 0 : vector<16x128xf32>, i32 -> vector<16x128xf32>
    %c4 = arith.constant 4 : index
    %c0_28 = arith.constant 0 : index
    %c0_29 = arith.constant 0 : index
    %79 = vector.load %arg3[%c4, %c0_28, %c0_29] : memref<5x16x1xf32, #tpu.memory_space<vmem>>, vector<1x16x1xf32>
    %80 = vector.shape_cast %79 : vector<1x16x1xf32> to vector<16x1xf32>
    %81 = vector.broadcast %80 : vector<16x1xf32> to vector<16x128xf32>
    %82 = arith.mulf %78, %81 : vector<16x128xf32>
    %83 = vector.extract_strided_slice %47 {offsets = [4, 0], sizes = [1, 128], strides = [1, 1]} : vector<5x128xf32> to vector<1x128xf32>
    %84 = vector.broadcast %83 : vector<1x128xf32> to vector<16x128xf32>
    %85 = arith.mulf %82, %84 : vector<16x128xf32>
    %86 = arith.addf %77, %85 : vector<16x128xf32>
    %87 = arith.truncf %86 : vector<16x128xf32> to vector<16x128xbf16>
    %c0_30 = arith.constant 0 : index
    %c0_31 = arith.constant 0 : index
    %88 = vector.load %arg9[%c0_30, %c0_31] : memref<16x128xbf16, #tpu.memory_space<vmem>>, vector<16x128xbf16>
    tpu.vector_store %arg9[%c0_30, %c0_31], %87 {strides = array<i32>} : memref<16x128xbf16, #tpu.memory_space<vmem>>, vector<16x128xbf16>,
    %89 = vector.shape_cast %4 : vector<16x1xf32> to vector<1x16x1xf32>
    %cst_32 = arith.constant dense<0.000000e+00> : vector<1xf32>
    %90 = vector.multi_reduction <add>, %89, %cst_32 [1, 2] : vector<1x16x1xf32> to vector<1xf32>
    %91 = vector.shape_cast %90 : vector<1xf32> to vector<1x1x1xf32>
    %92 = vector.extract %91[0, 0, 0] : f32 from vector<1x1x1xf32>
    %93 = vector.broadcast %4 : vector<16x1xf32> to vector<16x128xf32>
    %94 = arith.mulf %86, %93 : vector<16x128xf32>
    %cst_33 = arith.constant dense<0.000000e+00> : vector<128xf32>
    %95 = vector.multi_reduction <add>, %94, %cst_33 [0] : vector<16x128xf32> to vector<128xf32>
    %96 = vector.shape_cast %95 : vector<128xf32> to vector<1x128xf32>
    %cst_34 = arith.constant 1.000000e+00 : f32
    %97 = arith.maximumf %92, %cst_34 : f32
    %98 = vector.broadcast %97 : f32 to vector<1x128xf32>
    %99 = arith.divf %96, %98 : vector<1x128xf32>
    %100 = vector.broadcast %99 : vector<1x128xf32> to vector<16x128xf32>
    %101 = arith.subf %86, %100 : vector<16x128xf32>
    %102 = arith.mulf %101, %101 : vector<16x128xf32>
    %103 = vector.broadcast %4 : vector<16x1xf32> to vector<16x128xf32>
    %104 = arith.mulf %102, %103 : vector<16x128xf32>
    %cst_35 = arith.constant dense<0.000000e+00> : vector<128xf32>
    %105 = vector.multi_reduction <add>, %104, %cst_35 [0] : vector<16x128xf32> to vector<128xf32>
    %106 = vector.shape_cast %105 : vector<128xf32> to vector<1x128xf32>
    %cst_36 = arith.constant 0.000000e+00 : f32
    %107 = vector.broadcast %cst_36 : f32 to vector<1x128xf32>
    %108 = vector.broadcast %92 : f32 to vector<1x128xf32>
    %109 = arith.addf %107, %108 : vector<1x128xf32>
    %110 = tpu.concatenate %109, %96, %106 in 0 : vector<1x128xf32>, vector<1x128xf32>, vector<1x128xf32> -> vector<3x128xf32>
    %111 = vector.shape_cast %110 : vector<3x128xf32> to vector<1x3x128xf32>
    %c0_37 = arith.constant 0 : index
    %c0_38 = arith.constant 0 : index
    %c0_39 = arith.constant 0 : index
    %112 = vector.load %arg10[%c0_37, %c0_38, %c0_39] : memref<1x3x128xf32, #tpu.memory_space<vmem>>, vector<1x3x128xf32>
    tpu.vector_store %arg10[%c0_37, %c0_38, %c0_39], %111 {strides = array<i32>} : memref<1x3x128xf32, #tpu.memory_space<vmem>>, vector<1x3x128xf32>,
    return
  }
  func.func @transform_0(%arg0: i32) -> (i32, i32) {
    %c0_i32 = arith.constant 0 : i32
    %c0_i32_0 = arith.constant 0 : i32
    return %arg0, %c0_i32 : i32, i32
  }
  func.func @transform_1(%arg0: i32) -> (i32, i32) {
    %c0_i32 = arith.constant 0 : i32
    %c0_i32_0 = arith.constant 0 : i32
    return %arg0, %c0_i32 : i32, i32
  }
  func.func @transform_2(%arg0: i32) -> (i32, i32, i32) {
    %c0_i32 = arith.constant 0 : i32
    %c0_i32_0 = arith.constant 0 : i32
    %c0_i32_1 = arith.constant 0 : i32
    %c0_i32_2 = arith.constant 0 : i32
    return %c0_i32, %c0_i32_0, %c0_i32_1 : i32, i32, i32
  }
  func.func @transform_3(%arg0: i32) -> (i32, i32) {
    %c0_i32 = arith.constant 0 : i32
    %c0_i32_0 = arith.constant 0 : i32
    %c0_i32_1 = arith.constant 0 : i32
    return %c0_i32, %c0_i32_0 : i32, i32
  }
  func.func @transform_4(%arg0: i32) -> (i32, i32) {
    %c0_i32 = arith.constant 0 : i32
    %c0_i32_0 = arith.constant 0 : i32
    %c0_i32_1 = arith.constant 0 : i32
    return %c0_i32, %c0_i32_0 : i32, i32
  }
  func.func @transform_5(%arg0: i32) -> (i32, i32) {
    %c0_i32 = arith.constant 0 : i32
    %c0_i32_0 = arith.constant 0 : i32
    %c0_i32_1 = arith.constant 0 : i32
    return %c0_i32, %c0_i32_0 : i32, i32
  }
  func.func @transform_6(%arg0: i32) -> (i32, i32) {
    %c0_i32 = arith.constant 0 : i32
    %c0_i32_0 = arith.constant 0 : i32
    %c0_i32_1 = arith.constant 0 : i32
    return %c0_i32, %c0_i32_0 : i32, i32
  }
  func.func @transform_7(%arg0: i32) -> (i32, i32) {
    %c0_i32 = arith.constant 0 : i32
    %c0_i32_0 = arith.constant 0 : i32
    %c0_i32_1 = arith.constant 0 : i32
    return %c0_i32, %c0_i32_0 : i32, i32
  }
  func.func @transform_8(%arg0: i32) -> (i32, i32) {
    %c0_i32 = arith.constant 0 : i32
    %c0_i32_0 = arith.constant 0 : i32
    return %arg0, %c0_i32 : i32, i32
  }
  func.func @transform_9(%arg0: i32) -> (i32, i32, i32) {
    %c0_i32 = arith.constant 0 : i32
    %c0_i32_0 = arith.constant 0 : i32
    %c0_i32_1 = arith.constant 0 : i32
    return %arg0, %c0_i32, %c0_i32_0 : i32, i32, i32
  }
}

module attributes {stable_mosaic.version = 11 : i64} {
  func.func @_pass2_kernel(%arg0: i32, %arg1: memref<16x128xbf16, #tpu.memory_space<vmem>>, %arg2: memref<16x1xf32, #tpu.memory_space<vmem>>, %arg3: memref<1x128xf32, #tpu.memory_space<vmem>>, %arg4: memref<1x128xf32, #tpu.memory_space<vmem>>, %arg5: memref<128x128xbf16, #tpu.memory_space<vmem>>, %arg6: memref<1x128xf32, #tpu.memory_space<vmem>>, %arg7: memref<16x128xf32, #tpu.memory_space<vmem>>) attributes {dimension_semantics = [#tpu.dimension_semantics<parallel>], iteration_bounds = array<i64: 2>, scalar_prefetch = 0 : i64, scratch_operands = 0 : i64, tpu.core_type = #tpu.core_type<tc>, window_params = [{transform_indices = @transform_0, window_bounds = array<i64: 16, 128>}, {transform_indices = @transform_1, window_bounds = array<i64: 16, 1>}, {pipeline_mode = #tpu.pipeline_mode<synchronous>, transform_indices = @transform_2, window_bounds = array<i64: 1, 128>}, {pipeline_mode = #tpu.pipeline_mode<synchronous>, transform_indices = @transform_3, window_bounds = array<i64: 1, 128>}, {pipeline_mode = #tpu.pipeline_mode<synchronous>, transform_indices = @transform_4, window_bounds = array<i64: 128, 128>}, {pipeline_mode = #tpu.pipeline_mode<synchronous>, transform_indices = @transform_5, window_bounds = array<i64: 1, 128>}, {transform_indices = @transform_6, window_bounds = array<i64: 16, 128>}]} {
    %c0 = arith.constant 0 : index
    %c0_0 = arith.constant 0 : index
    %0 = vector.load %arg1[%c0, %c0_0] : memref<16x128xbf16, #tpu.memory_space<vmem>>, vector<16x128xbf16>
    %1 = arith.extf %0 : vector<16x128xbf16> to vector<16x128xf32>
    %c0_1 = arith.constant 0 : index
    %c0_2 = arith.constant 0 : index
    %2 = vector.load %arg2[%c0_1, %c0_2] : memref<16x1xf32, #tpu.memory_space<vmem>>, vector<16x1xf32>
    %cst = arith.constant 1.000000e+00 : f32
    %3 = vector.broadcast %cst : f32 to vector<16x1xf32>
    %4 = arith.subf %3, %2 : vector<16x1xf32>
    %c0_3 = arith.constant 0 : index
    %c0_4 = arith.constant 0 : index
    %5 = vector.load %arg3[%c0_3, %c0_4] : memref<1x128xf32, #tpu.memory_space<vmem>>, vector<1x128xf32>
    %6 = vector.broadcast %5 : vector<1x128xf32> to vector<16x128xf32>
    %7 = arith.mulf %1, %6 : vector<16x128xf32>
    %c0_5 = arith.constant 0 : index
    %c0_6 = arith.constant 0 : index
    %8 = vector.load %arg4[%c0_5, %c0_6] : memref<1x128xf32, #tpu.memory_space<vmem>>, vector<1x128xf32>
    %9 = vector.broadcast %8 : vector<1x128xf32> to vector<16x128xf32>
    %10 = arith.addf %7, %9 : vector<16x128xf32>
    %11 = vector.broadcast %4 : vector<16x1xf32> to vector<16x128xf32>
    %12 = arith.mulf %10, %11 : vector<16x128xf32>
    %13 = arith.negf %12 : vector<16x128xf32>
    %14 = math.exp %13 : vector<16x128xf32>
    %cst_7 = arith.constant 1.000000e+00 : f32
    %15 = vector.broadcast %cst_7 : f32 to vector<16x128xf32>
    %16 = arith.addf %15, %14 : vector<16x128xf32>
    %17 = arith.divf %15, %16 : vector<16x128xf32>
    %18 = arith.mulf %12, %17 : vector<16x128xf32>
    %19 = arith.truncf %18 : vector<16x128xf32> to vector<16x128xbf16>
    %c0_8 = arith.constant 0 : index
    %c0_9 = arith.constant 0 : index
    %20 = vector.load %arg5[%c0_8, %c0_9] : memref<128x128xbf16, #tpu.memory_space<vmem>>, vector<128x128xbf16>
    %cst_10 = arith.constant dense<0.000000e+00> : vector<16x128xf32>
    %21 = tpu.matmul %19, %20, %cst_10 {dimension_numbers = #tpu.dot_dimension_numbers<[1], [0], [0], [1], [0, 0, 1, 1], [], []>} : vector<16x128xbf16>, vector<128x128xbf16>, vector<16x128xf32> -> vector<16x128xf32>
    %c0_11 = arith.constant 0 : index
    %c0_12 = arith.constant 0 : index
    %22 = vector.load %arg6[%c0_11, %c0_12] : memref<1x128xf32, #tpu.memory_space<vmem>>, vector<1x128xf32>
    %23 = vector.broadcast %22 : vector<1x128xf32> to vector<16x128xf32>
    %24 = arith.addf %21, %23 : vector<16x128xf32>
    %c0_13 = arith.constant 0 : index
    %c0_14 = arith.constant 0 : index
    %25 = vector.load %arg7[%c0_13, %c0_14] : memref<16x128xf32, #tpu.memory_space<vmem>>, vector<16x128xf32>
    tpu.vector_store %arg7[%c0_13, %c0_14], %24 {strides = array<i32>} : memref<16x128xf32, #tpu.memory_space<vmem>>, vector<16x128xf32>,
    return
  }
  func.func @transform_0(%arg0: i32) -> (i32, i32) {
    %c0_i32 = arith.constant 0 : i32
    %c0_i32_0 = arith.constant 0 : i32
    return %arg0, %c0_i32 : i32, i32
  }
  func.func @transform_1(%arg0: i32) -> (i32, i32) {
    %c0_i32 = arith.constant 0 : i32
    %c0_i32_0 = arith.constant 0 : i32
    return %arg0, %c0_i32 : i32, i32
  }
  func.func @transform_2(%arg0: i32) -> (i32, i32) {
    %c0_i32 = arith.constant 0 : i32
    %c0_i32_0 = arith.constant 0 : i32
    %c0_i32_1 = arith.constant 0 : i32
    return %c0_i32, %c0_i32_0 : i32, i32
  }
  func.func @transform_3(%arg0: i32) -> (i32, i32) {
    %c0_i32 = arith.constant 0 : i32
    %c0_i32_0 = arith.constant 0 : i32
    %c0_i32_1 = arith.constant 0 : i32
    return %c0_i32, %c0_i32_0 : i32, i32
  }
  func.func @transform_4(%arg0: i32) -> (i32, i32) {
    %c0_i32 = arith.constant 0 : i32
    %c0_i32_0 = arith.constant 0 : i32
    %c0_i32_1 = arith.constant 0 : i32
    return %c0_i32, %c0_i32_0 : i32, i32
  }
  func.func @transform_5(%arg0: i32) -> (i32, i32) {
    %c0_i32 = arith.constant 0 : i32
    %c0_i32_0 = arith.constant 0 : i32
    %c0_i32_1 = arith.constant 0 : i32
    return %c0_i32, %c0_i32_0 : i32, i32
  }
  func.func @transform_6(%arg0: i32) -> (i32, i32) {
    %c0_i32 = arith.constant 0 : i32
    %c0_i32_0 = arith.constant 0 : i32
    return %arg0, %c0_i32 : i32, i32
  }
}

</mosaic_0001>

<bundles_post_ra>
// kernel: convolution_block.3
= control target key start
LH: loop header
LB: loop body
LE: loop exit
PB: predicated region body
PF: predicated region fallthrough
CT: control target
= control target key end

     0   :  { %11 = vsyncpa [#allocation3], 0  ;;  %s897_s0 = inlined_call_operand.vmem [shape: bf16[32,128], index: 0, kind: input, shape index: {}]   ;;  %s898_s1 = inlined_call_operand.vmem [shape: f32[32,1], index: 1, kind: input, shape index: {}]   ;;  %s899_s2 = inlined_call_operand.vmem [shape: f32[1,128], index: 2, kind: input, shape index: {}]   ;;  %s900_s3 = inlined_call_operand.vmem [shape: f32[1,128], index: 3, kind: input, shape index: {}]   ;;  %s901_s4 = inlined_call_operand.vmem [shape: bf16[128,128], index: 4, kind: input, shape index: {}]   ;;  %s902_s5 = inlined_call_operand.vmem [shape: f32[1,128], index: 5, kind: input, shape index: {}]   ;;  %s903_s6 = inlined_call_operand.hbm [shape: f32[32,128], index: 6, kind: output, shape index: {}]  }
   0x1   :  { %13 = vsyncpa [#allocation3 + $0x1], 0  ;;  %s756_s21 = smov 0   ;;  %s758_s22 = smov 0  }
   0x2   :  { %s760_s23 = smov 0   ;;  %s762_s24 = smov 0  }
   0x3 LB: > { %s777_s25 = sadd.s32 4294967295, %s713_s24   ;;  %s531_s26 = sadd.s32 4294967294, %s713_s24   ;;  %s713_s24 = sphi %s762_s24, %s909_s24   ;;  %s709_s23 = sphi %s760_s23, %s908_s23   ;;  %s705_s22 = sphi %s758_s22, %s907_s22   ;;  %s701_s21 = sphi %s756_s21, %s906_s21  }
   0x4   : > { %s781_s27 = sadd.s32 1, %s713_s24   ;;  %s162_s28 = sadd.s32 1, %s709_s23 }
   0x5   : > { %s159_s29 = ssub.s32 %s713_s24, %s781_s27  ;;  %p172_p0 = scmp.ne.s32.totalorder %s709_s23, %s705_s22 }
   0x6   : > { %p160_p1 = scmp.eq.s32.totalorder %s159_s29, 0  ;;  %p173_p2 = scmp.eq.s32.totalorder %s777_s25, 1 }
   0x7   : > { %p178_p3 = scmp.ne.s32.totalorder %s705_s22, %s701_s21  ;;  %p179_p4 = scmp.eq.s32.totalorder %s531_s26, 1 }
   0x8   : > { %s792_s30 = scalar_select %p160_p1, %s709_s23, %s162_s28  }
   0x9   : > { %p794_p5 = por %p173_p2, %p172_p0  ;;  %p798_p6 = por %p179_p4, %p178_p3 }
   0xa   : > { %p534_p7 = scmp.ge.s32.totalorder %s713_s24, 1  ;;  %p227_p8 = scmp.lt.s32.totalorder %s713_s24, 3 }
   0xc   : > { %p228_p9 = pnand %p534_p7, %p227_p8 }
   0xd   : > { %s536_s9 = sshll.u32 (!%p228_p9), %s777_s25, 1  ;;  %s558_s15 = sshll.u32 (!%p228_p9), %s777_s25, 8 }
   0xe   : > { %231 = sbr.rel (%p228_p9) target bundleno = 404 (0x194), region = 44  ;;  %p263_p10 = scmp.lt.s32.totalorder (!%p228_p9), %s536_s9, 3 }
   0xf   : > { %s855_s18 = scalar_lea.hbm (!%p228_p9), %s903_s6, %s558_s15  ;;  %s718_s25 = smov (!%p228_p9), [#allocation2]  }
  0x10   : > { %s657_s26 = sshll.u32 (!%p228_p9), %s718_s25, 4  ;;  %s658_s26 = int_to_ptr.vmem [resolvable:$false] %s657_s26 }
  0x11   : > { %s659_s28 = scalar_lea.vmem (!%p228_p9), %s658_s26, 512 }
  0x13   : > { %v715_v0 = vmov 0   ;;  %s911_s9 = smov (!%p263_p10, %s536_s9), 3  ;;  %v637_v5 = vld [vmem:[%s901_s4 + $0x38] sm:$0xff]   ;;  %v716_v6 = vmov 0.0   ;;  %v638_v7 = vld [vmem:[%s901_s4 + $0x30] sm:$0xff]   ;;  %v639_v8 = vld [vmem:[%s901_s4 + $0x28] sm:$0xff]  }
  0x14   : > { %636 = vset.pattern.permute.xlu0 %v715_v0  ;;  %s539_s10 = sshll.u32 %s911_s9, 3  ;;  %572 = vmatprep.subr.bf16.mxu0 %v716_v6  ;;  %v640_v9 = vld [vmem:[%s901_s4 + $0x20] sm:$0xff]   ;;  %v641_v10 = vld [vmem:[%s901_s4 + $0x18] sm:$0xff]   ;;  %v642_v11 = vld [vmem:[%s901_s4 + $0x10] sm:$0xff]   ;;  %vm717_vm0 = vmmov 0   ;;  %s537_s16 = sshll.u32 %s911_s9, 2 }
  0x15   : > { %s272_s13 = scalar_lea.vmem %s898_s1, %s539_s10  ;;  %573 = vmatpush3.bf16.msra.mxu0 %v637_v5  ;;  %v643_v12 = vld [vmem:[%s901_s4 + $0x8] sm:$0xff]   ;;  %v644_v13 = vld [vmem:[%s901_s4] sm:$0xff]   ;;  %588 = vmatprep.mubr.msk.bf16.mxu0 %vm717_vm0, %v716_v6  ;;  %s266_s19 = scalar_lea.vmem %s897_s0, %s537_s16 }
  0x16   : > { %v280_v1 = vld [vmem:[%s272_s13] sm:$0xff]  ;;  %v281_v2 = vld [vmem:[%s272_s13 + $0x8] sm:$0xff]  ;;  %574 = vmatprep.subr.bf16.mxu0 %v716_v6  ;;  %s259_s9 = sand.u32 1, %s705_s22  }
  0x17   : > { %v282_v3 = vsub.f32 1.0, %v280_v1  ;;  %v283_v4 = vsub.f32 1.0, %v281_v2  ;;  %v560_v14 = vld [vmem:[%s266_s19] sm:$0xff]   ;;  %s535_s10 = sshll.u32 %s259_s9, 4  ;;  %s857_s19 = scalar_lea.sflag [#allocation3], %s259_s9 }
  0x18   : > { %v561_v15 = vunpack.c.l.bf16 %v560_v14  ;;  %v540_v16 = vld [vmem:[%s899_s2] ss:$0 sm:$0xff]  ;;  %v562_v18 = vunpack.c.h.bf16 %v560_v14  ;;  %s261_s13 = scalar_lea.vmem [#allocation2], %s535_s10 }
  0x19   : > { %304 = vperm.xlu0 %636, %v282_v3   ;;  %575 = vmatpush3.bf16.msra.mxu0 %v638_v7  ;;  %v541_v19 = vld [vmem:[%s900_s3] ss:$0 sm:$0xff]  ;;  %s457_s14 = sshll.u32 %s261_s13, 4  ;;  %s850_s14 = int_to_ptr.vmem [resolvable:$true] %s457_s14 }
  0x1a   : > { %576 = vmatprep.subr.bf16.mxu0 %v716_v6  ;;  %v291_v17 = vmul.f32 %v561_v15, %v540_v16  ;;  %v292_v21 = vmul.f32 %v562_v18, %v540_v16  ;;  %v544_v38 = vld [vmem:[%s902_s5] ss:$0 sm:$0xff]  ;;  %s653_s20 = scalar_lea.vmem %s850_s14, 256  ;;  %p660_p0 = scmp.lt.s32.totalorder %s850_s14, %s658_s26 }
  0x1b   : > { %p654_p11 = scmp.ne.s32.totalorder %s850_s14, %s653_s20  ;;  %p661_p1 = scmp.lt.s32.totalorder %s659_s28, %s653_s20 }
  0x1c   : > { %v300_v20 = vadd.f32 %v541_v19, %v291_v17  ;;  %v301_v24 = vadd.f32 %v541_v19, %v292_v21 }
  0x1d   : > { %309 = vperm.xlu0 %636, %v283_v4   ;;  %577 = vmatpush3.bf16.msra.mxu0 %v639_v8  ;;  %p655_p12 = pnand %p654_p11, %p794_p5  ;;  %p662_p2 = por %p661_p1, %p660_p0 }
  0x1e   : > { %578 = vmatprep.subr.bf16.mxu0 %v716_v6 }
  0x1f   : > { %p656_p13 = pneg %p655_p12 }
  0x21   : > { %579 = vmatpush3.bf16.msra.mxu0 %v640_v9  ;;  %p663_p3 = pnand %p662_p2, %p656_p13 }
  0x22   : > { %580 = vmatprep.subr.bf16.mxu0 %v716_v6 }
  0x25   : > { %581 = vmatpush3.bf16.msra.mxu0 %v641_v10 }
  0x26   : > { %582 = vmatprep.subr.bf16.mxu0 %v716_v6 }
  0x29   : > { %583 = vmatpush3.bf16.msra.mxu0 %v642_v11 }
  0x2a   : > { %584 = vmatprep.subr.bf16.mxu0 %v716_v6 }
  0x2d   : > { %585 = vmatpush3.bf16.msra.mxu0 %v643_v12 }
  0x2e   : > { %586 = vmatprep.subr.bf16.mxu0 %v716_v6 }
  0x31   : > { %587 = vmatpush3.bf16.msra.mxu0 %v644_v13 }
  0x94   : > { %v305_v22 = vpop.permute.xlu0 %304 }
  0x95   : > { %v312_v23 = vmul.f32 %v305_v22, %v300_v20 }
  0x97   : > { %v542_v25 = vmul.f32 -1.442695, %v312_v23 }
  0x98   : > { %v310_v26 = vpop.permute.xlu0 %309 }
  0x99   : > { %645 = vpow2.f32 %v542_v25  ;;  %v313_v27 = vmul.f32 %v310_v26, %v301_v24 }
  0x9b   : > { %v543_v28 = vmul.f32 -1.442695, %v313_v27 }
  0x9d   : > { %647 = vpow2.f32 %v543_v28 }
  0xa6   : > { %v646_v29 = vpop.eup %645 }
  0xa7   : > { %v320_v30 = vadd.f32 1.0, %v646_v29 }
  0xa9   : > { %649 = vrcp.f32 %v320_v30 }
  0xaa   : > { %v648_v31 = vpop.eup %647 }
  0xab   : > { %v321_v32 = vadd.f32 1.0, %v648_v31 }
  0xad   : > { %651 = vrcp.f32 %v321_v32 }
  0xb6   : > { %v650_v33 = vpop.eup %649 }
  0xb7   : > { %v326_v35 = vmul.f32 %v650_v33, %v312_v23 }
  0xba   : > { %v652_v34 = vpop.eup %651 }
  0xbb   : > { %v327_v36 = vmul.f32 %v652_v34, %v313_v27 }
  0xbd   : > { %v328_v37 = vpack.c.bf16 %v327_v36, %v326_v35 }
  0xbf   : > { %589 = vmatmul.mubr.bf16.vlgmr.msra.gmra.mxu0 %v328_v37 }
 0x17f   : > { %v434_v39 = vpop.f32.mrf.mxu0 }
 0x180   : > { %v435_v40 = vadd.f32 %v544_v38, %v434_v39 }
 0x181   : > { %v590_v41 = vpop.f32.mrf.mxu0 }
 0x182   : > { %441 = vst [vmem:[%s261_s13] sm:$0xff] %v435_v40 }
 0x183   : > { %v437_v42 = vpop.f32.mrf.mxu0 }
 0x184   : > { %v438_v43 = vadd.f32 %v544_v38, %v437_v42 }
 0x185   : > { %v591_v44 = vpop.f32.mrf.mxu0 }
 0x186   : > { %442 = vst [vmem:[%s261_s13 + $0x8] sm:$0xff] %v438_v43 }
 0x187   : > { %666 = shalt.err (!%p663_p3)
}
 0x188   : > { %s667_s29 = scalar_lea.hbm %s855_s18, 256  ;;  %s671_s11 = scalar_lea.hbm %s903_s6, 512 }
 0x189   : > { %p668_p4 = scmp.ne.s32.totalorder %s855_s18, %s667_s29  ;;  %p672_p9 = scmp.lt.s32.totalorder %s855_s18, %s903_s6 }
 0x18a   : > { %p673_p10 = scmp.lt.s32.totalorder %s671_s11, %s667_s29 }
 0x18b   : > { %p669_p7 = pnand %p668_p4, %p794_p5 }
 0x18c   : > { %p674_p11 = por %p673_p10, %p672_p9 }
 0x18d   : > { %p670_p8 = pneg %p669_p7 }
 0x18f   : > { %p675_p12 = pnand %p674_p11, %p670_p8 }
 0x191   : > { %678 = shalt.err (!%p675_p12)
}
 0x192   : > { %s719_s15 = smov 128   ;;  %s720_s16 = smov 8  }
 0x193   : > { %592 = dma.vmem_to_hbm [thread:$0]  (%p794_p5), %s850_s14, 256, %s855_s18, %s857_s19, %s719_s15, %s719_s15, %s720_s16  }
 0x194 PF: > { %p598_p13 = scmp.ge.s32.totalorder %s713_s24, 2  ;;  %s472_s17 = sand.u32 1, %s701_s21  }
 0x195   : > { %s473_s20 = scalar_lea.sflag [#allocation3], %s472_s17 }
 0x196   : > { %p595_p0 = pnand %p598_p13, %p798_p6 }
 0x198   : > { %p596_p1 = pneg %p595_p0 }
 0x19a   : > { %696 = dma.done.wait (%p596_p1), %s473_s20, 256  }
 0x19b   : > { %698 = vsyncadd (%p596_p1), %s473_s20, 4294967040  ;;  %p16_p2 = scmp.ge.s32.totalorder %s781_s27, 4   ;;  %s906_s21 = smov %s705_s22 }
 0x19c   : > { %s907_s22 = smov %s709_s23  ;;  %s908_s23 = smov %s792_s30 }
 0x19d   : > { %s909_s24 = smov %s781_s27  ;;  %18 = sbr.rel (!%p16_p2) target bundleno = 3 (0x3), region = 82 }
 0x1a2   :  { %478 = vsyncpa [#allocation3], 1 }
 0x1a3   :  { %480 = vsyncpa [#allocation3 + $0x1], 1 }

// kernel: convolution_block.2
= control target key start
LH: loop header
LB: loop body
LE: loop exit
PB: predicated region body
PF: predicated region fallthrough
CT: control target
= control target key end

     0   :  { %15 = vsyncpa [#allocation3], 0  ;;  %s1112_s30 = smov 0   ;;  %s1258_s0 = inlined_call_operand.vmem [shape: bf16[32,128], index: 0, kind: input, shape index: {}]   ;;  %s1259_s1 = inlined_call_operand.vmem [shape: f32[32,1], index: 1, kind: input, shape index: {}]   ;;  %s1260_s2 = inlined_call_operand.vmem [shape: f32[5,16,1], index: 2, kind: input, shape index: {}]   ;;  %s1261_s3 = inlined_call_operand.vmem [shape: f32[1,128], index: 3, kind: input, shape index: {}]   ;;  %s1262_s4 = inlined_call_operand.vmem [shape: f32[1,128], index: 4, kind: input, shape index: {}]   ;;  %s1263_s5 = inlined_call_operand.hbm [shape: bf16[128,256], index: 5, kind: input, shape index: {}]   ;;  %s1264_s6 = inlined_call_operand.vmem [shape: f32[1,256], index: 6, kind: input, shape index: {}]   ;;  %s1265_s7 = inlined_call_operand.vmem [shape: f32[5,128], index: 7, kind: input, shape index: {}]   ;;  %s1266_s8 = inlined_call_operand.vmem [shape: bf16[32,128], index: 8, kind: output, shape index: {0}]   ;;  %s1267_s9 = inlined_call_operand.vmem [shape: f32[2,3,128], index: 9, kind: output, shape index: {1}]  }
   0x1 LB: > { %s1118_s10 = sadd.s32 4294967295, %s1055_s30   ;;  %p902_p0 = scmp.ge.s32.totalorder %s1055_s30, 1  ;;  %s1055_s30 = sphi %s1112_s30, %s21_s30  }
   0x2   : > { %p256_p1 = scmp.lt.s32.totalorder %s1055_s30, 3  ;;  %s1057_s11 = smov [#allocation2]  }
   0x3   : > { %s277_s12 = sshll.u32 %s1057_s11, 4  ;;  %p964_p3 = scmp.eq.s32.totalorder %s1118_s10, 0  ;;  %s278_s12 = int_to_ptr.vmem [resolvable:$true] %s277_s12 }
   0x4   : > { %p1122_p2 = pnand %p902_p0, %p256_p1  ;;  %s1030_s14 = scalar_lea.vmem %s278_s12, 2048 }
   0x5   : > { %p1031_p7 = scmp.ne.s32.totalorder %s278_s12, %s1030_s14  ;;  %p1038_p10 = scmp.lt.s32.totalorder %s278_s12, %s278_s12 }
   0x6   : > { %p960_p4 = pneg %p1122_p2  ;;  %p1039_p11 = scmp.lt.s32.totalorder %s1030_s14, %s1030_s14 }
   0x8   : > { %p961_p5 = pnand %p964_p3, %p960_p4  ;;  %p1040_p12 = por %p1039_p11, %p1038_p10 }
   0xa   : > { %p1021_p6 = pneg %p961_p5 }
   0xc   : > { %p1033_p8 = pnand %p1031_p7, %p1021_p6 }
   0xe   : > { %p1034_p9 = pneg %p1033_p8 }
  0x10   : > { %p1041_p13 = pnand %p1040_p12, %p1034_p9 }
  0x12   : > { %1044 = shalt.err (!%p1041_p13)
}
  0x13   : > { %s1058_s15 = smov 128   ;;  %s1059_s16 = smov 8  }
  0x14   : > { %963 = dma.hbm_to_vmem [thread:$0]  (!%p961_p5), %s1263_s5, 2048, %s278_s12, [#allocation3], %s1058_s15, %s1058_s15, %s1059_s16  }
  0x15   : > { %317 = sbr.rel (%p1122_p2) target bundleno = 640 (0x280), region = 52 }
  0x1a   : > { %1050 = dma.done.wait (%p964_p3), [#allocation3], 2048  }
  0x1b   : > { %1052 = vsyncadd (%p964_p3), [#allocation3], 4294965248  ;;  %s907_s19 = sshll.u32 %s1118_s10, 1  ;;  %v981_v3 = vld [vmem:[#allocation2 + $0x74] ss:$8 sps:$4 sm:$0xff]   ;;  %v1060_v22 = vmov 0   ;;  %v419_v49 = vlaneseq }
  0x1c   : > { %p363_p0 = scmp.lt.s32.totalorder %s907_s19, 3  ;;  %v983_v4 = vld [vmem:[#allocation2 + $0x70] ss:$8 sps:$4 sm:$0xff]   ;;  %544 = vmatprep.subr.bf16.mxu0 %v981_v3  ;;  %v984_v13 = vld [vmem:[#allocation2 + $0x64] ss:$8 sps:$4 sm:$0xff]   ;;  %576 = vmatprep.mubr.bf16.mxu0 %v1060_v22  ;;  %vm743_vm0 = vcmask 7168  }
  0x1d   : > { %545 = vmatpush1.bf16.msra.mxu0 %v983_v4  ;;  %v986_v14 = vld [vmem:[#allocation2 + $0x60] ss:$8 sps:$4 sm:$0xff]   ;;  %v987_v15 = vld [vmem:[#allocation2 + $0x54] ss:$8 sps:$4 sm:$0xff]   ;;  %v989_v16 = vld [vmem:[#allocation2 + $0x50] ss:$8 sps:$4 sm:$0xff]   ;;  %979 = vset.pattern.permute.xlu1 %v1060_v22 }
  0x1e   : > { %s1270_s19 = smov (!%p363_p0, %s907_s19), 3  ;;  %546 = vmatprep.subr.bf16.mxu0 %v984_v13  ;;  %v990_v17 = vld [vmem:[#allocation2 + $0x44] ss:$8 sps:$4 sm:$0xff]   ;;  %v992_v18 = vld [vmem:[#allocation2 + $0x40] ss:$8 sps:$4 sm:$0xff]   ;;  %980 = vset.pattern.permute.xlu0 %v1060_v22  ;;  %v933_v37 = vld [vmem:[%s1260_s2 + $0x10] sm:$0xff] }
  0x1f   : > { %s908_s20 = sshll.u32 %s1270_s19, 2  ;;  %v993_v19 = vld [vmem:[#allocation2 + $0x34] ss:$8 sps:$4 sm:$0xff]   ;;  %v995_v20 = vld [vmem:[#allocation2 + $0x30] ss:$8 sps:$4 sm:$0xff]   ;;  %s910_s24 = sshll.u32 %s1270_s19, 3 }
  0x20   : > { %s366_s23 = scalar_lea.vmem %s1258_s0, %s908_s20  ;;  %v996_v21 = vld [vmem:[#allocation2 + $0x24] ss:$8 sps:$4 sm:$0xff]   ;;  %v998_v23 = vld [vmem:[#allocation2 + $0x20] ss:$8 sps:$4 sm:$0xff]   ;;  %v999_v24 = vld [vmem:[#allocation2 + $0x14] ss:$8 sps:$4 sm:$0xff]   ;;  %s372_s27 = scalar_lea.vmem %s1259_s1, %s910_s24 }
  0x21   : > { %v946_v0 = vld [vmem:[%s366_s23] sm:$0xff]   ;;  %547 = vmatpush1.bf16.msra.mxu0 %v986_v14  ;;  %v1001_v25 = vld [vmem:[#allocation2 + $0x10] ss:$8 sps:$4 sm:$0xff]   ;;  %v390_v29 = vld [vmem:[%s372_s27 + $0x8] sm:$0xff]  ;;  %v1185_v50 = vshrl.u32 %v419_v49, 7  ;;  %s1061_s17 = smov 1.0   ;;  %s378_s23 = scalar_lea.vmem %s1266_s8, %s908_s20 }
  0x22   : > { %v947_v1 = vunpack.c.l.bf16 %v946_v0  ;;  %v948_v2 = vunpack.c.h.bf16 %v946_v0  ;;  %548 = vmatprep.subr.bf16.mxu0 %v987_v15  ;;  %v1002_v26 = vld [vmem:[#allocation2 + $0x4] ss:$8 sps:$4 sm:$0xff]   ;;  %v1004_v27 = vld [vmem:[#allocation2] ss:$8 sps:$4 sm:$0xff]   ;;  %v392_v31 = vsub.f32 1.0, %v390_v29  ;;  %v934_v38 = vld [vmem:[%s1260_s2 + $0x18] sm:$0xff] }
  0x23   : > { %v389_v28 = vld [vmem:[%s372_s27] sm:$0xff]  ;;  %v628_v36 = vld [vmem:[%s1260_s2 + $0x8] sm:$0xff]  ;;  %v935_v39 = vld [vmem:[%s1260_s2 + $0x30] sm:$0xff]  ;;  %v1191_v53 = vsub.s32 0, %v1185_v50  ;;  %vm624_vm1 = vcmp.lt.s32.totalorder %v1185_v50, 2  ;;  %vm651_vm2 = vcmp.lt.s32.totalorder %v1185_v50, 1 }
  0x24   : > { %393 = vadd.xlane.f32.xlu0 %v947_v1  ;;  %v391_v30 = vsub.f32 1.0, %v389_v28  ;;  %v745_v33 = vsel %vm743_vm0, %v392_v31, 0.0  ;;  %v627_v35 = vld [vmem:[%s1260_s2] sm:$0xff]  ;;  %v936_v40 = vld [vmem:[%s1260_s2 + $0x38] sm:$0xff]  ;;  %v938_v42 = vld [vmem:[%s1260_s2 + $0x48] sm:$0xff]  ;;  %vm679_vm3 = vcmp.lt.s32.totalorder %v1185_v50, 7 }
  0x25   : > { %549 = vmatpush1.bf16.msra.mxu0 %v989_v16  ;;  %v937_v41 = vld [vmem:[%s1260_s2 + $0x40] sm:$0xff]  ;;  %vm707_vm4 = vcmp.lt.s32.totalorder %v1185_v50, 6  ;;  %p380_p1 = scmp.lt.s32.totalorder %s1118_s10, 1  ;;  %vm784_vm5 = vcmask 1040384   ;;  %vm786_vm6 = vcmask 1041408  }
  0x26   : > { %550 = vmatprep.subr.bf16.mxu0 %v990_v17  ;;  %v744_v32 = vsel %vm743_vm0, %v391_v30, 0.0  ;;  %v416_v51 = vld [vmem:[%s1261_s3] sm:$0x1] }
  0x27   : > { %v746_v34 = vadd.f32 %v745_v33, %v744_v32  ;;  %v417_v52 = vadd.f32 1.0, %v416_v51  ;;  %v914_v60 = vld [vmem:[%s1262_s4] ss:$0 sm:$0xff]  ;;  %v616_v33 = vsub.s32 2, %v1185_v50  ;;  %s1272_s10 = smov (!%p380_p1, %s1118_s10), 1 }
  0x28   : > { %395 = vadd.xlane.f32.xlu0 %v948_v2  ;;  %s913_s19 = sshll.u32 %s1272_s10, 2 }
  0x29   : > { %551 = vmatpush1.bf16.msra.mxu0 %v992_v18  ;;  %v422_v56 = vrot.slane %v417_v52, %v1191_v53  ;;  %s383_s25 = scalar_lea.vmem %s1267_s9, %s913_s19 }
  0x2a   : > { %552 = vmatprep.subr.bf16.mxu0 %v993_v19 }
  0x2c   : > { %747 = vadd.xlane.f32.xlu0 %v746_v34  ;;  %v613_v34 = vld [vmem:[%s1265_s7] sm:$0x1f] }
  0x2d   : > { %553 = vmatpush1.bf16.msra.mxu0 %v995_v20 }
  0x2e   : > { %554 = vmatprep.subr.bf16.mxu0 %v996_v21 }
  0x31   : > { %555 = vmatpush1.bf16.msra.mxu0 %v998_v23 }
  0x32   : > { %556 = vmatprep.subr.bf16.mxu0 %v999_v24 }
  0x35   : > { %557 = vmatpush1.bf16.msra.mxu0 %v1001_v25 }
  0x36   : > { %558 = vmatprep.subr.bf16.mxu0 %v1002_v26 }
  0x39   : > { %559 = vmatpush1.bf16.msra.mxu0 %v1004_v27 }
  0x42   : > { %608 = vperm.xlu0 %980, %v392_v31  }
  0xad   : > { %v394_v5 = vpop.xlane.xlu0 %393 }
  0xae   : > { %v398_v6 = vmul.f32 0.0078125, %v394_v5 }
  0xb0   : > { %v1149_v7 = vsub.f32 %v947_v1, %v398_v6 }
  0xb1   : > { %v396_v8 = vpop.xlane.xlu0 %395 }
  0xb2   : > { %v399_v9 = vmul.f32 0.0078125, %v396_v8  ;;  %v402_v10 = vmul.f32 %v1149_v7, %v1149_v7  ;;  %v460_v8 = vsub.s32 1, %v1185_v50 }
  0xb4   : > { %v1153_v11 = vsub.f32 %v948_v2, %v399_v9  ;;  %404 = vadd.xlane.f32.xlu1 %v402_v10  ;;  %v452_v9 = vld [vmem:[%s1264_s6] sm:$0x3] }
  0xb5   : > { %v748_v1 = vpop.xlane.xlu0 %747  ;;  %v461_v10 = vrot.slane %v452_v9, %v460_v8  ;;  %v457_v28 = vrot.slane %v452_v9, %v1191_v53 }
  0xb6   : > { %v403_v12 = vmul.f32 %v1153_v11, %v1153_v11  ;;  %v749_v2 = vrot.slane %v748_v1, 4 }
  0xb8   : > { %406 = vadd.xlane.f32.xlu1 %v403_v12  ;;  %v750_v3 = vadd.f32 %v749_v2, %v748_v1 }
  0xba   : > { %v751_v4 = vrot.slane %v750_v3, 2 }
  0xbc   : > { %v752_v5 = vadd.f32 %v751_v4, %v750_v3 }
  0xbe   : > { %v753_v6 = vrot.slane %v752_v5, 1 }
  0xc9   : > { %603 = vperm.xlu1 %979, %v391_v30  }
  0xcd   : > { %631 = vperm.xlu1 %979, %v627_v35  }
  0xd1   : > { %636 = vperm.xlu1 %979, %v628_v36  }
  0xd5   : > { %659 = vperm.xlu1 %979, %v933_v37  }
  0xd9   : > { %664 = vperm.xlu1 %979, %v934_v38  }
  0xdd   : > { %687 = vperm.xlu1 %979, %v935_v39   ;;  %v699_v39 = vsub.s32 3, %v1185_v50 }
  0xe1   : > { %692 = vperm.xlu1 %979, %v936_v40   ;;  %v1212_v40 = vpop.permute.xlu0 %608 }
  0xe5   : > { %715 = vperm.xlu1 %979, %v937_v41  }
  0xe9   : > { %720 = vperm.xlu1 %979, %v938_v42   ;;  %v672_v42 = vrot.slane %v613_v34, %v460_v8 }
 0x13d   : > { %v405_v43 = vpop.xlane.xlu1 %404 }
 0x13e   : > { %v408_v44 = vmul.f32 0.0078125, %v405_v43  ;;  %v617_v43 = vrot.slane %v613_v34, %v616_v33 }
 0x140   : > { %v410_v45 = vadd.f32 1e-06, %v408_v44  ;;  %v727_v44 = vsub.s32 4, %v1185_v50 }
 0x141   : > { %v407_v46 = vpop.xlane.xlu1 %406 }
 0x142   : > { %1005 = vrsqrt.f32 %v410_v45  ;;  %v409_v47 = vmul.f32 0.0078125, %v407_v46  ;;  %v644_v45 = vrot.slane %v613_v34, %v1191_v53 }
 0x144   : > { %v411_v48 = vadd.f32 1e-06, %v409_v47 }
 0x145   : > { %v1203_v13 = vpop.permute.xlu1 %603 }
 0x146   : > { %1007 = vrsqrt.f32 %v411_v48  ;;  %v700_v48 = vrot.slane %v613_v34, %v699_v39 }
 0x149   : > { %v632_v19 = vpop.permute.xlu1 %631 }
 0x14d   : > { %v637_v21 = vpop.permute.xlu1 %636 }
 0x14f   : > { %v1006_v54 = vpop.eup %1005 }
 0x150   : > { %v414_v55 = vmul.f32 %v1006_v54, %v1149_v7  ;;  %v754_v7 = vadd.f32 %v753_v6, %v752_v5 }
 0x151   : > { %v660_v23 = vpop.permute.xlu1 %659 }
 0x152   : > { %v424_v59 = vmul.f32 %v422_v56, %v414_v55  ;;  %954 = vpush %v754_v7 }
 0x153   : > { %v1008_v57 = vpop.eup %1007 }
 0x154   : > { %v415_v58 = vmul.f32 %v1008_v57, %v1153_v11  ;;  %v433_v62 = vadd.f32 %v914_v60, %v424_v59 }
 0x155   : > { %v665_v27 = vpop.permute.xlu1 %664 }
 0x156   : > { %v425_v61 = vmul.f32 %v422_v56, %v415_v58  ;;  %v728_v58 = vrot.slane %v613_v34, %v727_v44 }
 0x158   : > { %v434_v63 = vadd.f32 %v914_v60, %v425_v61 }
 0x159   : > { %v688_v29 = vpop.permute.xlu1 %687 }
 0x15a   : > { %v435_v0 = vpack.c.bf16 %v434_v63, %v433_v62 }
 0x15c   : > { %577 = vmatmul.mubr.bf16.vlgmr.msra.gmra.mxu0 %v435_v0 }
 0x15d   : > { %v693_v36 = vpop.permute.xlu1 %692 }
 0x161   : > { %v716_v49 = vpop.permute.xlu1 %715 }
 0x183   : > { %s1237_s16 = spop %954 }
 0x184   : > { %s765_s18 = smax.f32 %s1061_s17, %s1237_s16 }
 0x21c   : > { %v578_v11 = vpop.f32.mrf.mxu0 }
 0x21d   : > { %v579_v30 = vadd.f32 %v578_v11, %v457_v28  ;;  %v721_v11 = vpop.permute.xlu1 %720 }
 0x21e   : > { %v580_v12 = vpop.f32.mrf.mxu0 }
 0x21f   : > { %v581_v14 = vadd.f32 %v580_v12, %v461_v10 }
 0x220   : > { %v582_v15 = vpop.f32.mrf.mxu0 }
 0x221   : > { %v931_v16 = vmul.f32 -1.442695, %v581_v14  ;;  %v583_v35 = vadd.f32 %v582_v15, %v457_v28 }
 0x222   : > { %v584_v17 = vpop.f32.mrf.mxu0 }
 0x223   : > { %1009 = vpow2.f32 %v931_v16  ;;  %v585_v18 = vadd.f32 %v584_v17, %v461_v10 }
 0x225   : > { %v932_v20 = vmul.f32 -1.442695, %v585_v18 }
 0x227   : > { %1011 = vpow2.f32 %v932_v20 }
 0x230   : > { %v1010_v22 = vpop.eup %1009 }
 0x231   : > { %v593_v24 = vadd.f32 1.0, %v1010_v22 }
 0x233   : > { %1013 = vrcp.f32 %v593_v24 }
 0x234   : > { %v1012_v25 = vpop.eup %1011 }
 0x235   : > { %v594_v26 = vadd.f32 1.0, %v1012_v25 }
 0x237   : > { %1015 = vrcp.f32 %v594_v26 }
 0x240   : > { %v1014_v31 = vpop.eup %1013 }
 0x241   : > { %v599_v32 = vmul.f32 %v1014_v31, %v579_v30  ;;  %v766_v30 = vstv %s765_s18 }
 0x242   : > { %1017 = vrcp.f32 %v766_v30 }
 0x243   : > { %v611_v38 = vmul.f32 %v1203_v13, %v599_v32 }
 0x244   : > { %v1016_v37 = vpop.eup %1015 }
 0x245   : > { %v600_v41 = vmul.f32 %v1016_v37, %v583_v35  ;;  %v620_v47 = vrot.slane %v611_v38, 6  ;;  %v649_v51 = vrot.slane %v611_v38, 7  ;;  %v677_v56 = vrot.slane %v611_v38, 1 }
 0x246   : > { %v705_v57 = vrot.slane %v611_v38, 2  ;;  %v618_v7 = vmul.f32 %v617_v43, %v611_v38 }
 0x247   : > { %v612_v46 = vmul.f32 %v1212_v40, %v600_v41 }
 0x249   : > { %v621_v52 = vrot.slane %v612_v46, 6  ;;  %v650_v54 = vrot.slane %v612_v46, 7  ;;  %v678_v55 = vrot.slane %v612_v46, 1  ;;  %v706_v59 = vrot.slane %v612_v46, 2 }
 0x24a   : > { %v619_v8 = vmul.f32 %v617_v43, %v612_v46 }
 0x24b   : > { %v625_v53 = vsel %vm624_vm1, %v620_v47, %v621_v52  ;;  %v626_v60 = vsel %vm624_vm1, %v621_v52, %v620_v47  ;;  %v652_v61 = vsel %vm651_vm2, %v649_v51, %v650_v54  ;;  %v653_v62 = vsel %vm651_vm2, %v650_v54, %v649_v51 }
 0x24c   : > { %v639_v63 = vmul.f32 %v632_v19, %v626_v60  ;;  %v640_v0 = vmul.f32 %v637_v21, %v625_v53  ;;  %v667_v1 = vmul.f32 %v660_v23, %v653_v62  ;;  %v668_v2 = vmul.f32 %v665_v27, %v652_v61 }
 0x24d   : > { %v680_v3 = vsel %vm679_vm3, %v677_v56, %v678_v55  ;;  %v681_v4 = vsel %vm679_vm3, %v678_v55, %v677_v56  ;;  %v708_v5 = vsel %vm707_vm4, %v705_v57, %v706_v59  ;;  %v709_v6 = vsel %vm707_vm4, %v706_v59, %v705_v57 }
 0x24e   : > { %v645_v9 = vmul.f32 %v644_v45, %v639_v63  ;;  %v646_v10 = vmul.f32 %v644_v45, %v640_v0  ;;  %v673_v12 = vmul.f32 %v672_v42, %v667_v1  ;;  %v674_v14 = vmul.f32 %v672_v42, %v668_v2 }
 0x24f   : > { %v695_v15 = vmul.f32 %v688_v29, %v680_v3  ;;  %v696_v16 = vmul.f32 %v693_v36, %v681_v4  ;;  %v723_v19 = vmul.f32 %v716_v49, %v708_v5  ;;  %v724_v20 = vmul.f32 %v721_v11, %v709_v6  ;;  %v1018_v42 = vpop.eup %1017 }
 0x250   : > { %v647_v17 = vadd.f32 %v645_v9, %v618_v7  ;;  %v648_v18 = vadd.f32 %v646_v10, %v619_v8  ;;  %v782_v59 = vstv %s1237_s16 }
 0x251   : > { %v701_v22 = vmul.f32 %v700_v48, %v695_v15  ;;  %v702_v23 = vmul.f32 %v700_v48, %v696_v16  ;;  %v729_v26 = vmul.f32 %v728_v58, %v723_v19  ;;  %v730_v27 = vmul.f32 %v728_v58, %v724_v20 }
 0x252   : > { %v675_v21 = vadd.f32 %v673_v12, %v647_v17  ;;  %v676_v50 = vadd.f32 %v674_v14, %v648_v18 }
 0x254   : > { %v703_v24 = vadd.f32 %v701_v22, %v675_v21  ;;  %v704_v25 = vadd.f32 %v702_v23, %v676_v50 }
 0x256   : > { %v731_v28 = vadd.f32 %v729_v26, %v703_v24  ;;  %v732_v29 = vadd.f32 %v730_v27, %v704_v25 }
 0x258   : > { %v952_v31 = vpack.c.bf16 %v732_v29, %v731_v28  ;;  %v756_v32 = vmul.f32 %v731_v28, %v1203_v13  ;;  %v757_v33 = vmul.f32 %v732_v29, %v1212_v40 }
 0x25a   : > { %953 = vst [vmem:[%s378_s23] sm:$0xff] %v952_v31   ;;  %v758_v34 = vadd.f32 %v757_v33, %v756_v32 }
 0x25c   : > { %v759_v35 = vrot.slane %v758_v34, 4 }
 0x25e   : > { %v760_v36 = vadd.f32 %v759_v35, %v758_v34 }
 0x260   : > { %v761_v37 = vrot.slane %v760_v36, 2 }
 0x262   : > { %v762_v38 = vadd.f32 %v761_v37, %v760_v36 }
 0x264   : > { %v763_v39 = vrot.slane %v762_v38, 1 }
 0x266   : > { %v764_v41 = vadd.f32 %v763_v39, %v762_v38 }
 0x268   : > { %v768_v43 = vmul.f32 %v1018_v42, %v764_v41 }
 0x26a   : > { %v769_v44 = vsub.f32 %v731_v28, %v768_v43  ;;  %v770_v45 = vsub.f32 %v732_v29, %v768_v43 }
 0x26c   : > { %v771_v46 = vmul.f32 %v769_v44, %v769_v44  ;;  %v772_v47 = vmul.f32 %v770_v45, %v770_v45 }
 0x26e   : > { %v773_v48 = vmul.f32 %v771_v46, %v1203_v13  ;;  %v774_v49 = vmul.f32 %v772_v47, %v1212_v40  ;;  %v785_v13 = vsel %vm784_vm5, %v782_v59, %v764_v41 }
 0x270   : > { %v775_v51 = vadd.f32 %v774_v49, %v773_v48 }
 0x272   : > { %v776_v52 = vrot.slane %v775_v51, 4 }
 0x274   : > { %v777_v54 = vadd.f32 %v776_v52, %v775_v51 }
 0x276   : > { %v778_v55 = vrot.slane %v777_v54, 2 }
 0x278   : > { %v779_v56 = vadd.f32 %v778_v55, %v777_v54 }
 0x27a   : > { %v780_v57 = vrot.slane %v779_v56, 1 }
 0x27c   : > { %v781_v58 = vadd.f32 %v780_v57, %v779_v56 }
 0x27e   : > { %v787_v53 = vsel %vm786_vm6, %v785_v13, %v781_v58 }
 0x27f   : > { %788 = vst [vmem:[%s383_s25] sm:$0x7] %v787_v53 }
 0x280 PF: > { %s21_s30 = sadd.s32 1, %s1055_s30  }
 0x281   : > { %p18_p2 = scmp.ge.s32.totalorder %s21_s30, 4  }
 0x283   :  { %20 = sbr.rel (!%p18_p2) target bundleno = 1 (0x1), region = 105 }
 0x288   :  { %825 = vsyncpa [#allocation3], 1 }
 0x289   :  { %827 = vsyncpa [#allocation3 + $0x1], 1 }

</bundles_post_ra>
